<compile_context>
chip_gen: v5e
topology: v5e:2x2
jax: 0.10.0
libtpu: 0.0.40
codegen_flags: <defaults>
</compile_context>

<pallas_src>
import jax
import jax.numpy as jnp
from jax.experimental import pallas as pl
from jax.experimental.pallas import tpu as pltpu


def _round_up(x, m):
    return ((x + m - 1) // m) * m


def _task_embed_kernel(x_ref, mask_ref, w_ref, b_ref, out_ref, num_acc, den_acc):
    """One (B-tile, S-tile) grid step.

    x_ref    : (tb, ts, Hp) bfloat16  token inputs
    mask_ref : (tb, ts, 1)  float32   attention mask (0/1)
    w_ref    : (Hp, Hp)     bfloat16  projection weight (resident)
    b_ref    : (1, Hp)      float32   projection bias   (resident)
    out_ref  : (tb, Hp)     float32   pooled task embedding (written on last S step)
    num_acc  : (tb, Hp)     float32   VMEM scratch: masked-sum accumulator
    den_acc  : (tb, 1)      float32   VMEM scratch: mask-count accumulator
    """
    j = pl.program_id(1)

    @pl.when(j == 0)
    def _init():
        num_acc[...] = jnp.zeros_like(num_acc)
        den_acc[...] = jnp.zeros_like(den_acc)

    tb, ts, hp = x_ref.shape

    # --- encoder stand-in: bf16 matmul on the MXU, f32 accumulation ---
    x2 = x_ref[...].reshape(tb * ts, hp)                       # bf16 (tb*ts, Hp)
    proj = jnp.dot(x2, w_ref[...], preferred_element_type=jnp.float32)
    tok = jnp.tanh(proj + b_ref[...]).reshape(tb, ts, hp)      # f32 (tb, ts, Hp)

    # --- masked-sum accumulation for this S-tile (small per-tile XLU reduce) ---
    m = mask_ref[...]                                          # (tb, ts, 1) f32
    num_acc[...] += jnp.sum(tok * m, axis=1)                   # (tb, Hp)
    den_acc[...] += jnp.sum(m, axis=1)                         # (tb, 1)

    # --- finalize: divide once, on the last S step ---
    @pl.when(j == pl.num_programs(1) - 1)
    def _finalize():
        den = jnp.maximum(den_acc[...], 1e-9)                  # clamp(min=1e-9)
        out_ref[...] = (num_acc[...] * pl.reciprocal(den, approx=True)).astype(
            out_ref.dtype
        )


def single_task_embedding(cq_input, cq_input_mask, emb_table, w, b,
                          *, ts_max=128, tb_max=8):
    """Forward pass matching SingleTaskEmbedding (non-bart branch).

    cq_input      : (B, S) int32 token ids
    cq_input_mask : (B, S) int/float attention mask
    emb_table     : (V, H) float32 embedding table
    w, b          : (H, H), (1, H) float32 projection params
    returns       : (B, H) float32 pooled embedding
    """
    B, S = cq_input.shape
    V, H = emb_table.shape

    # Lane-dense hidden axis: pad H up to a multiple of 128.
    Hp = _round_up(H, 128)
    # Sequence tile: multiple of 8 sublanes, capped at ts_max; pad S to a tile multiple.
    ts = ts_max if S >= ts_max else _round_up(S, 8)
    Sp = _round_up(S, ts)
    # Batch tile: 8 when possible (sublane-friendly (tb, Hp) output tiles).
    tb = tb_max if B >= tb_max else B
    Bp = _round_up(B, tb)

    # Pad parameters once (bf16 for the MXU operands, f32 for the bias).
    emb_p = jnp.zeros((V, Hp), jnp.bfloat16).at[:, :H].set(emb_table.astype(jnp.bfloat16))
    w_p = jnp.zeros((Hp, Hp), jnp.bfloat16).at[:H, :H].set(w.astype(jnp.bfloat16))
    b_p = jnp.zeros((1, Hp), jnp.float32).at[:, :H].set(b.astype(jnp.float32))

    # Pad ids / mask; padded tokens & batch rows are masked out (and sliced away).
    ids = jnp.zeros((Bp, Sp), jnp.int32).at[:B, :S].set(cq_input.astype(jnp.int32))
    mask = jnp.zeros((Bp, Sp, 1), jnp.float32).at[:B, :S, 0].set(
        cq_input_mask.astype(jnp.float32)
    )

    # TODO(synk): fuse this embedding gather into the kernel (scalar-prefetch of the
    # ids + manual DMA row-gather from emb_table in HBM) to avoid materializing
    # x in HBM; kept as a plain JAX gather (bf16 halves its HBM footprint).
    x = emb_p[ids]                                             # (Bp, Sp, Hp) bf16

    grid = (Bp // tb, Sp // ts)

    out = pl.pallas_call(
        _task_embed_kernel,
        out_shape=jax.ShapeDtypeStruct((Bp, Hp), jnp.float32),
        grid_spec=pltpu.PrefetchScalarGridSpec(
            num_scalar_prefetch=0,
            grid=grid,
            in_specs=[
                pl.BlockSpec((tb, ts, Hp), lambda i, j: (i, j, 0)),   # x
                pl.BlockSpec((tb, ts, 1), lambda i, j: (i, j, 0)),    # mask
                pl.BlockSpec((Hp, Hp), lambda i, j: (0, 0)),          # W (resident)
                pl.BlockSpec((1, Hp), lambda i, j: (0, 0)),           # b (resident)
            ],
            out_specs=pl.BlockSpec((tb, Hp), lambda i, j: (i, 0)),
            scratch_shapes=[
                pltpu.VMEM((tb, Hp), jnp.float32),   # masked-sum accumulator
                pltpu.VMEM((tb, 1), jnp.float32),    # mask-count accumulator
            ],
        ),
        compiler_params=pltpu.CompilerParams(
            dimension_semantics=("parallel", "arbitrary"),
            vmem_limit_bytes=48 * 1024 * 1024,
        ),
    )(x, mask, w_p, b_p)

    return out[:B, :H]


def _reference(cq_input, cq_input_mask, emb_table, w, b):
    """Pure-JAX f32 reference with the original module's semantics."""
    x = emb_table[cq_input].astype(jnp.float32)
    tok = jnp.tanh(jnp.einsum("bsh,hk->bsk", x, w) + b[None, :, :])
    m = cq_input_mask.astype(jnp.float32)[..., None]
    num = jnp.sum(tok * m, axis=1)
    den = jnp.maximum(jnp.sum(m, axis=1), 1e-9)
    return num / den


def _run_case(seed, B, S, H, V):
    key = jax.random.PRNGKey(seed)
    k_emb, k_w, k_b, k_ids, k_len = jax.random.split(key, 5)

    emb_table = jax.random.normal(k_emb, (V, H), dtype=jnp.float32) * 0.1
    w = jax.random.normal(k_w, (H, H), dtype=jnp.float32) * 0.1
    b = jax.random.normal(k_b, (1, H), dtype=jnp.float32) * 0.01

    cq_input = jax.random.randint(k_ids, (B, S), 0, V, dtype=jnp.int32)
    lengths = jax.random.randint(k_len, (B,), 1, S + 1, dtype=jnp.int32)
    cq_input_mask = (jnp.arange(S)[None, :] < lengths[:, None]).astype(jnp.int32)

    out = single_task_embedding(cq_input, cq_input_mask, emb_table, w, b)
    out = jax.block_until_ready(out)

    ref = _reference(cq_input, cq_input_mask, emb_table, w, b)
    assert out.shape == (B, H)
    # bf16 matmul + approx reciprocal -> compare against the f32 reference with a
    # tolerance that comfortably covers the bf16 rounding error.
    assert jnp.allclose(out, ref, atol=1e-2, rtol=5e-2), float(
        jnp.max(jnp.abs(out - ref))
    )


if __name__ == "__main__":
    # Small config consistent with the module (batch=2, seq=8, hidden=32).
    _run_case(seed=0, B=2, S=8, H=32, V=64)
    # Slightly larger config that exercises the (B-tile, S-tile) grid and the
    # S-axis accumulator (2 x 2 grid after padding).
    _run_case(seed=1, B=16, S=256, H=128, V=128)
    print("KERNEL_OK")
</pallas_src>

<mosaic_0001>
module attributes {stable_mosaic.version = 11 : i64} {
  func.func @_task_embed_kernel(%arg0: i32, %arg1: i32, %arg2: memref<2x8x128xbf16, #tpu.memory_space<vmem>>, %arg3: memref<2x8x1xf32, #tpu.memory_space<vmem>>, %arg4: memref<128x128xbf16, #tpu.memory_space<vmem>>, %arg5: memref<1x128xf32, #tpu.memory_space<vmem>>, %arg6: memref<2x128xf32, #tpu.memory_space<vmem>>, %arg7: memref<2x128xf32, #tpu.memory_space<vmem>>, %arg8: memref<2x1xf32, #tpu.memory_space<vmem>>) attributes {dimension_semantics = [#tpu.dimension_semantics<parallel>, #tpu.dimension_semantics<arbitrary>], iteration_bounds = array<i64: 1, 1>, scalar_prefetch = 0 : i64, scratch_operands = 2 : i64, tpu.core_type = #tpu.core_type<tc>, window_params = [{transform_indices = @transform_0, window_bounds = array<i64: 2, 8, 128>}, {transform_indices = @transform_1, window_bounds = array<i64: 2, 8, 1>}, {pipeline_mode = #tpu.pipeline_mode<synchronous>, transform_indices = @transform_2, window_bounds = array<i64: 128, 128>}, {pipeline_mode = #tpu.pipeline_mode<synchronous>, transform_indices = @transform_3, window_bounds = array<i64: 1, 128>}, {transform_indices = @transform_4, window_bounds = array<i64: 2, 128>}]} {
    %c0_i32 = arith.constant 0 : i32
    %0 = arith.cmpi eq, %arg1, %c0_i32 : i32
    %1 = arith.extui %0 : i1 to i32
    %c0_i32_0 = arith.constant 0 : i32
    %2 = arith.cmpi ne, %1, %c0_i32_0 : i32
    scf.if %2 {
      %cst_22 = arith.constant 0.000000e+00 : f32
      %26 = vector.broadcast %cst_22 : f32 to vector<2x128xf32>
      %c0_23 = arith.constant 0 : index
      %c0_24 = arith.constant 0 : index
      %27 = vector.load %arg7[%c0_23, %c0_24] : memref<2x128xf32, #tpu.memory_space<vmem>>, vector<2x128xf32>
      tpu.vector_store %arg7[%c0_23, %c0_24], %26 {strides = array<i32>} : memref<2x128xf32, #tpu.memory_space<vmem>>, vector<2x128xf32>,
      %cst_25 = arith.constant 0.000000e+00 : f32
      %28 = vector.broadcast %cst_25 : f32 to vector<2x1xf32>
      %c0_26 = arith.constant 0 : index
      %c0_27 = arith.constant 0 : index
      %29 = vector.load %arg8[%c0_26, %c0_27] : memref<2x1xf32, #tpu.memory_space<vmem>>, vector<2x1xf32>
      tpu.vector_store %arg8[%c0_26, %c0_27], %28 {strides = array<i32>} : memref<2x1xf32, #tpu.memory_space<vmem>>, vector<2x1xf32>,
    } else {
    }
    %c0 = arith.constant 0 : index
    %c0_1 = arith.constant 0 : index
    %c0_2 = arith.constant 0 : index
    %3 = vector.load %arg2[%c0, %c0_1, %c0_2] : memref<2x8x128xbf16, #tpu.memory_space<vmem>>, vector<2x8x128xbf16>
    %4 = vector.shape_cast %3 : vector<2x8x128xbf16> to vector<16x128xbf16>
    %c0_3 = arith.constant 0 : index
    %c0_4 = arith.constant 0 : index
    %5 = vector.load %arg4[%c0_3, %c0_4] : memref<128x128xbf16, #tpu.memory_space<vmem>>, vector<128x128xbf16>
    %cst = arith.constant dense<0.000000e+00> : vector<16x128xf32>
    %6 = tpu.matmul %4, %5, %cst {dimension_numbers = #tpu.dot_dimension_numbers<[1], [0], [0], [1], [0, 0, 1, 1], [], []>} : vector<16x128xbf16>, vector<128x128xbf16>, vector<16x128xf32> -> vector<16x128xf32>
    %c0_5 = arith.constant 0 : index
    %c0_6 = arith.constant 0 : index
    %7 = vector.load %arg5[%c0_5, %c0_6] : memref<1x128xf32, #tpu.memory_space<vmem>>, vector<1x128xf32>
    %8 = vector.broadcast %7 : vector<1x128xf32> to vector<16x128xf32>
    %9 = arith.addf %6, %8 : vector<16x128xf32>
    %10 = math.tanh %9 : vector<16x128xf32>
    %11 = vector.shape_cast %10 : vector<16x128xf32> to vector<2x8x128xf32>
    %c0_7 = arith.constant 0 : index
    %c0_8 = arith.constant 0 : index
    %c0_9 = arith.constant 0 : index
    %12 = vector.load %arg3[%c0_7, %c0_8, %c0_9] : memref<2x8x1xf32, #tpu.memory_space<vmem>>, vector<2x8x1xf32>
    %c0_10 = arith.constant 0 : index
    %c0_11 = arith.constant 0 : index
    %13 = vector.load %arg7[%c0_10, %c0_11] : memref<2x128xf32, #tpu.memory_space<vmem>>, vector<2x128xf32>
    %14 = vector.broadcast %12 : vector<2x8x1xf32> to vector<2x8x128xf32>
    %15 = arith.mulf %11, %14 : vector<2x8x128xf32>
    %cst_12 = arith.constant dense<0.000000e+00> : vector<2x128xf32>
    %16 = vector.multi_reduction <add>, %15, %cst_12 [1] : vector<2x8x128xf32> to vector<2x128xf32>
    %17 = arith.addf %13, %16 : vector<2x128xf32>
    %c0_13 = arith.constant 0 : index
    %c0_14 = arith.constant 0 : index
    %18 = vector.load %arg7[%c0_13, %c0_14] : memref<2x128xf32, #tpu.memory_space<vmem>>, vector<2x128xf32>
    tpu.vector_store %arg7[%c0_13, %c0_14], %17 {strides = array<i32>} : memref<2x128xf32, #tpu.memory_space<vmem>>, vector<2x128xf32>,
    %c0_15 = arith.constant 0 : index
    %c0_16 = arith.constant 0 : index
    %19 = vector.load %arg8[%c0_15, %c0_16] : memref<2x1xf32, #tpu.memory_space<vmem>>, vector<2x1xf32>
    %cst_17 = arith.constant dense<0.000000e+00> : vector<2x1xf32>
    %20 = vector.multi_reduction <add>, %12, %cst_17 [1] : vector<2x8x1xf32> to vector<2x1xf32>
    %21 = arith.addf %19, %20 : vector<2x1xf32>
    %c0_18 = arith.constant 0 : index
    %c0_19 = arith.constant 0 : index
    %22 = vector.load %arg8[%c0_18, %c0_19] : memref<2x1xf32, #tpu.memory_space<vmem>>, vector<2x1xf32>
    tpu.vector_store %arg8[%c0_18, %c0_19], %21 {strides = array<i32>} : memref<2x1xf32, #tpu.memory_space<vmem>>, vector<2x1xf32>,
    %c0_i32_20 = arith.constant 0 : i32
    %23 = arith.cmpi eq, %arg1, %c0_i32_20 : i32
    %24 = arith.extui %23 : i1 to i32
    %c0_i32_21 = arith.constant 0 : i32
    %25 = arith.cmpi ne, %24, %c0_i32_21 : i32
    scf.if %25 {
      %c0_22 = arith.constant 0 : index
      %c0_23 = arith.constant 0 : index
      %26 = vector.load %arg8[%c0_22, %c0_23] : memref<2x1xf32, #tpu.memory_space<vmem>>, vector<2x1xf32>
      %cst_24 = arith.constant 9.99999971E-10 : f32
      %27 = vector.broadcast %cst_24 : f32 to vector<2x1xf32>
      %28 = arith.maximumf %26, %27 : vector<2x1xf32>
      %c0_25 = arith.constant 0 : index
      %c0_26 = arith.constant 0 : index
      %29 = vector.load %arg7[%c0_25, %c0_26] : memref<2x128xf32, #tpu.memory_space<vmem>>, vector<2x128xf32>
      %30 = tpu.reciprocal %28 {approx = true} : vector<2x1xf32> -> vector<2x1xf32>
      %31 = vector.broadcast %30 : vector<2x1xf32> to vector<2x128xf32>
      %32 = arith.mulf %29, %31 : vector<2x128xf32>
      %c0_27 = arith.constant 0 : index
      %c0_28 = arith.constant 0 : index
      %33 = vector.load %arg6[%c0_27, %c0_28] : memref<2x128xf32, #tpu.memory_space<vmem>>, vector<2x128xf32>
      tpu.vector_store %arg6[%c0_27, %c0_28], %32 {strides = array<i32>} : memref<2x128xf32, #tpu.memory_space<vmem>>, vector<2x128xf32>,
    } else {
    }
    return
  }
  func.func @transform_0(%arg0: i32, %arg1: i32) -> (i32, i32, i32) {
    %c0_i32 = arith.constant 0 : i32
    %c0_i32_0 = arith.constant 0 : i32
    return %arg0, %arg1, %c0_i32 : i32, i32, i32
  }
  func.func @transform_1(%arg0: i32, %arg1: i32) -> (i32, i32, i32) {
    %c0_i32 = arith.constant 0 : i32
    %c0_i32_0 = arith.constant 0 : i32
    return %arg0, %arg1, %c0_i32 : i32, i32, i32
  }
  func.func @transform_2(%arg0: i32, %arg1: i32) -> (i32, i32) {
    %c0_i32 = arith.constant 0 : i32
    %c0_i32_0 = arith.constant 0 : i32
    %c0_i32_1 = arith.constant 0 : i32
    return %c0_i32, %c0_i32_0 : i32, i32
  }
  func.func @transform_3(%arg0: i32, %arg1: i32) -> (i32, i32) {
    %c0_i32 = arith.constant 0 : i32
    %c0_i32_0 = arith.constant 0 : i32
    %c0_i32_1 = arith.constant 0 : i32
    return %c0_i32, %c0_i32_0 : i32, i32
  }
  func.func @transform_4(%arg0: i32, %arg1: i32) -> (i32, i32) {
    %c0_i32 = arith.constant 0 : i32
    %c0_i32_0 = arith.constant 0 : i32
    return %arg0, %c0_i32 : i32, i32
  }
}

</mosaic_0001>

<bundles_post_ra>
// kernel: tpu_custom_call.1
= control target key start
LH: loop header
LB: loop body
LE: loop exit
PB: predicated region body
PF: predicated region fallthrough
CT: control target
= control target key end

     0   :  { %9 = vsyncpa [#allocation5], 0  ;;  %s386_s0 = inlined_call_operand.vmem [shape: bf16[2,8,128], index: 0, kind: input, shape index: {}]   ;;  %s387_s1 = inlined_call_operand.vmem [shape: f32[2,8,1], index: 1, kind: input, shape index: {}]   ;;  %s388_s2 = inlined_call_operand.hbm [shape: bf16[128,128], index: 2, kind: input, shape index: {}]   ;;  %s389_s3 = inlined_call_operand.vmem [shape: f32[1,128], index: 3, kind: input, shape index: {}]   ;;  %s390_s4 = inlined_call_operand.hbm [shape: f32[2,128], index: 4, kind: output, shape index: {}]  }
   0x1   :  { %10 = vsyncpa [#allocation6], 0  ;;  %s19_s17 = sshll.u32 %s388_s2, 4  ;;  %s333_s18 = smov [#allocation4]   ;;  %s20_s17 = int_to_ptr.hbm [resolvable:$true] %s19_s17 }
   0x2   :  { %s21_s19 = sshll.u32 %s333_s18, 4  ;;  %s334_s20 = smov 64   ;;  %s22_s19 = int_to_ptr.vmem [resolvable:$true] %s21_s19 }
   0x3   :  { %s335_s21 = smov 4  }
   0x4   :  { %27 = dma.hbm_to_vmem [thread:$0]  %s20_s17, 1024, %s22_s19, [#allocation5], %s334_s20, %s334_s20, %s335_s21  }
   0x5   :  { %329 = dma.done.wait [#allocation5], 1024  }
   0x6   :  { %330 = vsyncadd [#allocation5], 4294966272  ;;  %v265_v0 = vld [vmem:[#allocation4 + $0x38] sm:$0xff]  ;;  %vm168_vm0 = vcmask 7168   ;;  %v264_v1 = vld [vmem:[#allocation4 + $0x30] sm:$0xff]  ;;  %v336_v2 = vmov 0  }
   0x7   :  { %117 = vmatpush.bf16.msra.mxu0 %v265_v0  ;;  %272 = vset.pattern.permute.xlu0 %v336_v2  ;;  %vm39_vm1 = vcmask 1024   ;;  %v133_v3 = vld [vmem:[%s387_s1] sm:$0xff]  ;;  %v134_v4 = vld [vmem:[%s387_s1 + $0x8] sm:$0xff]  ;;  %v337_v5 = vmov 0.0   ;;  %vm162_vm2 = vcmask 1041409   ;;  %v260_v25 = vld [vmem:[#allocation4 + $0x10] sm:$0xff] }
   0x8   :  { %40 = vst.msk [vmem:[#allocation3] sm:$0x3] %vm39_vm1, %v337_v5  ;;  %273 = vset.pattern.permute.xlu1 %v336_v2  ;;  %138 = vperm.xlu0 %272, %v133_v3   ;;  %v169_v6 = vsel %vm168_vm0, %v133_v3, 0.0  ;;  %v176_v7 = vsel %vm168_vm0, %v134_v4, 0.0  ;;  %v263_v10 = vld [vmem:[#allocation4 + $0x28] sm:$0xff]  ;;  %v262_v15 = vld [vmem:[#allocation4 + $0x20] sm:$0xff] }
   0x9   :  { %38 = vst [vmem:[#allocation2] sm:$0x3] %v337_v5  ;;  %v170_v8 = vrot.slane %v169_v6, 4  ;;  %v177_v9 = vrot.slane %v176_v7, 4  ;;  %v261_v20 = vld [vmem:[#allocation4 + $0x18] sm:$0xff]  ;;  %v259_v27 = vld [vmem:[#allocation4 + $0x8] sm:$0xff] }
   0xa   :  { %v258_v28 = vld [vmem:[#allocation4] sm:$0xff]  ;;  %v274_v33 = vld [vmem:[%s389_s3] ss:$0 sm:$0xff]  ;;  %s211_s30 = sshll.u32 %s390_s4, 4  ;;  %s212_s30 = int_to_ptr.hbm [resolvable:$true] %s211_s30 }
   0xb   :  { %118 = vmatpush.bf16.msra.mxu0 %v264_v1  ;;  %v171_v11 = vadd.f32 %v170_v8, %v169_v6  ;;  %v178_v12 = vadd.f32 %v177_v9, %v176_v7  ;;  %v257_v31 = vld [vmem:[%s386_s0] sm:$0xff]  ;;  %s338_s0 = smov [#allocation7]  }
   0xc   :  { %s209_s3 = sshll.u32 %s338_s0, 4  ;;  %s210_s3 = int_to_ptr.vmem [resolvable:$true] %s209_s3 }
   0xd   :  { %v172_v13 = vrot.slane %v171_v11, 2  ;;  %v179_v14 = vrot.slane %v178_v12, 2 }
   0xf   :  { %119 = vmatpush.bf16.msra.mxu0 %v263_v10  ;;  %v173_v16 = vadd.f32 %v172_v13, %v171_v11  ;;  %v180_v17 = vadd.f32 %v179_v14, %v178_v12  ;;  %v167_v23 = vld [vmem:[#allocation3] sm:$0x3] }
  0x10   :  { %143 = vperm.xlu0 %272, %v134_v4   ;;  %v135_v55 = vld [vmem:[#allocation2] sm:$0x3] }
  0x11   :  { %v174_v18 = vrot.slane %v173_v16, 1  ;;  %v181_v19 = vrot.slane %v180_v17, 1 }
  0x13   :  { %120 = vmatpush.bf16.msra.mxu0 %v262_v15  ;;  %v175_v21 = vadd.f32 %v174_v18, %v173_v16  ;;  %v182_v22 = vadd.f32 %v181_v19, %v180_v17 }
  0x15   :  { %v185_v24 = vsel %vm162_vm2, %v182_v22, %v175_v21 }
  0x16   :  { %v187_v26 = vadd.f32 %v185_v24, %v167_v23 }
  0x17   :  { %121 = vmatpush.bf16.msra.mxu0 %v261_v20 }
  0x18   :  { %189 = vst.msk [vmem:[#allocation3] sm:$0x3] %vm39_vm1, %v187_v26 }
  0x1b   :  { %122 = vmatpush.bf16.msra.mxu0 %v260_v25 }
  0x1f   :  { %123 = vmatpush.bf16.msra.mxu0 %v259_v27  ;;  %v193_v29 = vld [vmem:[#allocation3] sm:$0x3] }
  0x20   :  { %v194_v30 = vmax.f32 %v193_v29, 1e-09 }
  0x22   :  { %275 = vrcp.f32 %v194_v30 }
  0x23   :  { %124 = vmatpush.bf16.msra.mxu0 %v258_v28 }
  0x26   :  { %125 = vmatmul.bf16.vlgmr.msra.gmra.mxu0 %v257_v31 }
  0x28   :  { %v276_v32 = vpop.eup %275 }
  0x29   :  { %199 = vperm.xlu1 %273, %v276_v32  }
  0x7a   :  { %v139_v36 = vpop.permute.xlu0 %138 }
  0x82   :  { %v144_v44 = vpop.permute.xlu0 %143 }
  0x9b   :  { %v200_v59 = vpop.permute.xlu1 %199 }
  0xa3   :  { %v126_v34 = vpop.f32.mrf.mxu0 }
  0xa4   :  { %v127_v35 = vadd.f32 %v274_v33, %v126_v34 }
  0xa6   :  { %277 = vtanh.f32 %v127_v35 }
  0xab   :  { %v128_v37 = vpop.f32.mrf.mxu0 }
  0xac   :  { %v278_v38 = vpop.eup %277  ;;  %v129_v39 = vadd.f32 %v274_v33, %v128_v37 }
  0xad   :  { %v146_v40 = vmul.f32 %v278_v38, %v139_v36 }
  0xae   :  { %279 = vtanh.f32 %v129_v39 }
  0xaf   :  { %v148_v41 = vrot.slane %v146_v40, 4 }
  0xb1   :  { %v149_v42 = vadd.f32 %v148_v41, %v146_v40 }
  0xb3   :  { %v150_v45 = vrot.slane %v149_v42, 2 }
  0xb4   :  { %v280_v43 = vpop.eup %279 }
  0xb5   :  { %v147_v46 = vmul.f32 %v280_v43, %v144_v44  ;;  %v151_v48 = vadd.f32 %v150_v45, %v149_v42 }
  0xb7   :  { %v154_v47 = vrot.slane %v147_v46, 4  ;;  %v152_v51 = vrot.slane %v151_v48, 1 }
  0xb9   :  { %v155_v49 = vadd.f32 %v154_v47, %v147_v46  ;;  %v153_v54 = vadd.f32 %v152_v51, %v151_v48 }
  0xbb   :  { %v156_v50 = vrot.slane %v155_v49, 2 }
  0xbd   :  { %v157_v52 = vadd.f32 %v156_v50, %v155_v49 }
  0xbf   :  { %v158_v53 = vrot.slane %v157_v52, 1 }
  0xc1   :  { %v159_v56 = vadd.f32 %v158_v53, %v157_v52 }
  0xc3   :  { %v163_v57 = vsel %vm162_vm2, %v159_v56, %v153_v54 }
  0xc4   :  { %v165_v58 = vadd.f32 %v163_v57, %v135_v55 }
  0xc6   :  { %166 = vst [vmem:[#allocation2] sm:$0x3] %v165_v58 }
  0xcd   :  { %v195_v60 = vld [vmem:[#allocation2] sm:$0x3] }
  0xce   :  { %v202_v61 = vmul.f32 %v200_v59, %v195_v60 }
  0xd0   :  { %203 = vst [vmem:[#allocation7] sm:$0x3] %v202_v61 }
  0xd1   :  { %214 = dma.vmem_to_hbm [thread:$0]  %s210_s3, 32, %s212_s30, [#allocation6]  }
  0xd2   :  { %331 = dma.done.wait [#allocation6], 32  }
  0xd3   :  { %332 = vsyncadd [#allocation6], 4294967264 }
  0xd4   :  { %219 = vsyncpa [#allocation5], 1 }
  0xd5   :  { %220 = vsyncpa [#allocation6], 1 }

</bundles_post_ra>
